<compile_context>
chip_gen: v6e
topology: v6e:2x2x1
jax: 0.10.0
libtpu: 0.0.40
codegen_flags: <defaults>
</compile_context>

<pallas_src>
import jax
import jax.numpy as jnp
from jax.experimental import pallas as pl
from jax.experimental.pallas import tpu as pltpu


def _abs_sum_kernel(g_ref, out_ref):
    """Per-tile sum of |grad| reduced over sublanes, kept lane-dense.

    g_ref:   (TM, W) block of the flattened grad, native dtype.
    out_ref: (1, 1, W) f32 partial sums for this tile.
    """
    g = g_ref[...].astype(jnp.float32)   # cast after DMA (keeps HBM traffic in native dtype)
    a = jnp.abs(g)
    out_ref[...] = jnp.sum(a, axis=0, keepdims=True)[None]   # (1, 1, W), unmasked lane-dense store


def grad_reg(outputs, grad, x, y, *, lane_width=512, max_block_rows=512, interpret=False):
    """Pallas forward of GradReg: returns mean(|grad|).

    `outputs`, `x`, `y` (and PyTorch's `model` arg) do not affect the result and
    are ignored, exactly like the reference module.
    """
    del outputs, x, y  # unused by GradReg.forward

    flat = grad.reshape(-1)            # native dtype, no wrapper up-cast
    n_total = flat.shape[0]

    W = int(lane_width)                                    # multiple of 128 (lane-dense)
    rows = -(-n_total // W)                                # ceil-div
    tm = min(int(max_block_rows), -(-rows // 8) * 8)       # block rows: multiple of 8, capped
    padded_rows = -(-rows // tm) * tm
    num_tiles = padded_rows // tm

    pad = padded_rows * W - n_total                        # zero padding: |0| adds nothing
    if pad:
        flat = jnp.pad(flat, (0, pad))
    g2d = flat.reshape(padded_rows, W)

    partials = pl.pallas_call(
        _abs_sum_kernel,
        out_shape=jax.ShapeDtypeStruct((num_tiles, 1, W), jnp.float32),
        grid=(num_tiles,),
        in_specs=[pl.BlockSpec((tm, W), lambda i: (i, 0))],
        out_specs=pl.BlockSpec((1, 1, W), lambda i: (i, 0, 0)),
        compiler_params=pltpu.CompilerParams(
            dimension_semantics=("parallel",)),            # independent tiles -> both v7x TCs
        interpret=interpret,
    )(g2d)

    # Tiny final reduction + mean normalization with the TRUE element count.
    return jnp.sum(partials) / jnp.float32(n_total)


if __name__ == "__main__":
    key = jax.random.PRNGKey(0)
    k1, k2, k3, k4 = jax.random.split(key, 4)

    B, C_in, H, Wd, n_classes = 2, 4, 16, 16, 10
    x = jax.random.uniform(k1, (B, C_in, H, Wd), jnp.float32)          # image-like input (unused)
    grad = jax.random.normal(k2, (B, C_in, H, Wd), jnp.float32)        # saliency/grad map
    outputs = jax.random.normal(k3, (B, n_classes), jnp.float32)       # logits (unused)
    y = jax.random.randint(k4, (B,), 0, n_classes, dtype=jnp.int32)    # labels (unused)

    xloss = grad_reg(outputs, grad, x, y)
    xloss = jax.block_until_ready(xloss)

    ref = jnp.mean(jnp.abs(grad))
    assert jnp.allclose(xloss, ref, rtol=1e-5, atol=1e-5), (xloss, ref)

    print("KERNEL_OK")
</pallas_src>

<mosaic_0001>
module attributes {stable_mosaic.version = 11 : i64} {
  func.func @_abs_sum_kernel(%arg0: i32, %arg1: memref<8x512xf32, #tpu.memory_space<vmem>>, %arg2: memref<1x1x512xf32, #tpu.memory_space<vmem>>) attributes {dimension_semantics = [#tpu.dimension_semantics<parallel>], iteration_bounds = array<i64: 1>, scalar_prefetch = 0 : i64, scratch_operands = 0 : i64, tpu.core_type = #tpu.core_type<tc>, window_params = [{transform_indices = @transform_0, window_bounds = array<i64: 8, 512>}, {transform_indices = @transform_1, window_bounds = array<i64: 1, 1, 512>}]} {
    %c0 = arith.constant 0 : index
    %c0_0 = arith.constant 0 : index
    %0 = vector.load %arg1[%c0, %c0_0] : memref<8x512xf32, #tpu.memory_space<vmem>>, vector<8x512xf32>
    %1 = math.absf %0 : vector<8x512xf32>
    %cst = arith.constant dense<0.000000e+00> : vector<512xf32>
    %2 = vector.multi_reduction <add>, %1, %cst [0] : vector<8x512xf32> to vector<512xf32>
    %3 = vector.shape_cast %2 : vector<512xf32> to vector<1x512xf32>
    %4 = vector.shape_cast %3 : vector<1x512xf32> to vector<1x1x512xf32>
    %c0_1 = arith.constant 0 : index
    %c0_2 = arith.constant 0 : index
    %c0_3 = arith.constant 0 : index
    %5 = vector.load %arg2[%c0_1, %c0_2, %c0_3] : memref<1x1x512xf32, #tpu.memory_space<vmem>>, vector<1x1x512xf32>
    tpu.vector_store %arg2[%c0_1, %c0_2, %c0_3], %4 {strides = array<i32>} : memref<1x1x512xf32, #tpu.memory_space<vmem>>, vector<1x1x512xf32>,
    return
  }
  func.func @transform_0(%arg0: i32) -> (i32, i32) {
    %c0_i32 = arith.constant 0 : i32
    %c0_i32_0 = arith.constant 0 : i32
    return %arg0, %c0_i32 : i32, i32
  }
  func.func @transform_1(%arg0: i32) -> (i32, i32, i32) {
    %c0_i32 = arith.constant 0 : i32
    %c0_i32_0 = arith.constant 0 : i32
    %c0_i32_1 = arith.constant 0 : i32
    return %arg0, %c0_i32, %c0_i32_0 : i32, i32, i32
  }
}

</mosaic_0001>

<bundles_post_ra>
// kernel: tpu_custom_call.1
= control target key start
LH: loop header
LB: loop body
LE: loop exit
PB: predicated region body
PF: predicated region fallthrough
CT: control target
= control target key end

     0   :  { %6 = vsyncpa [#allocation3], 0  ;;  %s168_s0 = inlined_call_operand.hbm [shape: f32[8,512], index: 0, kind: input, shape index: {}]   ;;  %s169_s1 = inlined_call_operand.hbm [shape: f32[1,1,512], index: 1, kind: output, shape index: {}]  }
   0x1   :  { %7 = vsyncpa [#allocation4], 0  ;;  %s149_s6 = smov [#allocation2]  }
   0x2   :  { %s14_s7 = sshll.u32 %s149_s6, 4  ;;  %s15_s7 = int_to_ptr.vmem [resolvable:$true] %s14_s7 }
   0x3   :  { %s113_s8 = scalar_lea.vmem %s15_s7, 512  ;;  %p118_p1 = scmp.lt.s32.totalorder %s15_s7, %s15_s7 }
   0x4   :  { %p114_p0 = scmp.ne.s32.totalorder %s15_s7, %s113_s8  ;;  %p119_p2 = scmp.lt.s32.totalorder %s113_s8, %s113_s8 }
   0x6   :  { %p120_p3 = por %p119_p2, %p118_p1 }
   0x8   :  { %p121_p4 = pnand %p120_p3, %p114_p0 }
   0xa   :  { %124 = shalt.err (!%p121_p4)
}
   0xb   :  { %17 = dma.hbm_to_vmem [thread:$0]  %s168_s0, 512, %s15_s7, [#allocation3]  }
   0xc   :  { %145 = dma.done.wait [#allocation3], 512  }
   0xd   :  { %146 = vsyncadd [#allocation3], 4294966784  ;;  %v21_v0 = vld [vmem:[#allocation2] sm:$0xff]  ;;  %v22_v1 = vld [vmem:[#allocation2 + $0x8] sm:$0xff]  ;;  %v150_v14 = vmov 1966171168   ;;  %v62_v16 = vlaneseq }
   0xe   :  { %v23_v2 = vld [vmem:[#allocation2 + $0x10] sm:$0xff]  ;;  %v24_v3 = vld [vmem:[#allocation2 + $0x18] sm:$0xff]  ;;  %v25_v4 = vand.u32 2147483647, %v21_v0  ;;  %v26_v5 = vand.u32 2147483647, %v22_v1  ;;  %v60_v15 = vunpack.c.l.s4 %v150_v14 }
   0xf   :  { %v27_v6 = vand.u32 2147483647, %v23_v2  ;;  %v28_v7 = vand.u32 2147483647, %v24_v3  ;;  %v63_v26 = vshrl.u32 %v62_v16, 7  ;;  %s151_s0 = smov [#allocation5]  }
  0x10   :  { %v29_v8 = vrot.slane %v25_v4, 4  ;;  %v35_v9 = vrot.slane %v26_v5, 4  ;;  %v61_v25 = vunpack.c.0.s8 %v60_v15  ;;  %s93_s11 = sshll.u32 %s151_s0, 4  ;;  %vm84_vm0 = vcmp.lt.s32.totalorder %v62_v16, 512  ;;  %s94_s11 = int_to_ptr.vmem [resolvable:$true] %s93_s11 }
  0x11   :  { %v41_v10 = vrot.slane %v27_v6, 4  ;;  %v47_v11 = vrot.slane %v28_v7, 4  ;;  %s125_s12 = scalar_lea.vmem %s94_s11, 64  ;;  %p130_p6 = scmp.lt.s32.totalorder %s94_s11, %s94_s11 }
  0x12   :  { %v30_v12 = vadd.f32 %v29_v8, %v25_v4  ;;  %v36_v13 = vadd.f32 %v35_v9, %v26_v5  ;;  %v64_v35 = vsub.s32 %v61_v25, %v63_v26  ;;  %p126_p5 = scmp.ne.s32.totalorder %s94_s11, %s125_s12  ;;  %p131_p7 = scmp.lt.s32.totalorder %s125_s12, %s125_s12 }
  0x13   :  { %v42_v17 = vadd.f32 %v41_v10, %v27_v6  ;;  %v48_v18 = vadd.f32 %v47_v11, %v28_v7 }
  0x14   :  { %v31_v19 = vrot.slane %v30_v12, 2  ;;  %v37_v20 = vrot.slane %v36_v13, 2  ;;  %p132_p8 = por %p131_p7, %p130_p6 }
  0x15   :  { %v43_v21 = vrot.slane %v42_v17, 2  ;;  %v49_v22 = vrot.slane %v48_v18, 2 }
  0x16   :  { %v32_v23 = vadd.f32 %v31_v19, %v30_v12  ;;  %v38_v24 = vadd.f32 %v37_v20, %v36_v13  ;;  %p133_p9 = pnand %p132_p8, %p126_p5 }
  0x17   :  { %v44_v27 = vadd.f32 %v43_v21, %v42_v17  ;;  %v50_v28 = vadd.f32 %v49_v22, %v48_v18 }
  0x18   :  { %v33_v29 = vrot.slane %v32_v23, 1  ;;  %v39_v30 = vrot.slane %v38_v24, 1 }
  0x19   :  { %v45_v31 = vrot.slane %v44_v27, 1  ;;  %v51_v32 = vrot.slane %v50_v28, 1 }
  0x1a   :  { %v34_v33 = vadd.f32 %v33_v29, %v32_v23  ;;  %v40_v34 = vadd.f32 %v39_v30, %v38_v24 }
  0x1b   :  { %v46_v36 = vadd.f32 %v45_v31, %v44_v27  ;;  %v52_v37 = vadd.f32 %v51_v32, %v50_v28 }
  0x1c   :  { %v57_v38 = vcombine.low %v34_v33, %v40_v34 }
  0x1d   :  { %v58_v39 = vcombine.low %v46_v36, %v52_v37 }
  0x1e   :  { %v65_v40 = vrot.slane %v57_v38, %v64_v35 }
  0x1f   :  { %v72_v41 = vrot.slane %v58_v39, %v64_v35 }
  0x21   :  { %v73_v42 = vcombine.low %v65_v40, %v72_v41 }
  0x23   :  { %v80_v43 = vrot.slane %v73_v42, %v64_v35 }
  0x25   :  { %86 = vst.msk [vmem:[#allocation5] sm:$0xf] %vm84_vm0, %v80_v43 }
  0x26   :  { %136 = shalt.err (!%p133_p9)
}
  0x27   :  { %96 = dma.vmem_to_hbm [thread:$0]  %s94_s11, 64, %s169_s1, [#allocation4]  }
  0x28   :  { %147 = dma.done.wait [#allocation4], 64  }
  0x29   :  { %148 = vsyncadd [#allocation4], 4294967232 }
  0x2a   :  { %100 = vsyncpa [#allocation3], 1 }
  0x2b   :  { %101 = vsyncpa [#allocation4], 1 }

</bundles_post_ra>
